<compile_context>
chip_gen: v7x
topology: tpu7x:2x2x1
jax: 0.10.0
libtpu: 0.0.40
codegen_flags: <defaults>
</compile_context>

<pallas_src>
import jax
import jax.numpy as jnp
from jax.experimental import pallas as pl
from jax.experimental.pallas import tpu as pltpu


def _round_up(x, m):
    return ((x + m - 1) // m) * m


# ----------------------------------------------------------------------------
# Kernel: 4 MXU dots (heads L1, heads L2 folded w/ shared embedding, decoder
# L1, decoder L2), 2 ReLUs, everything resident in VMEM.  MXU operands may be
# bf16; accumulation, bias adds and ReLUs stay f32.
# ----------------------------------------------------------------------------
def _mha_kernel(
    x_ref,                 # (TB, K_pad)            packed+padded inputs (mxu dtype)
    W1_ref, b1_ref,        # (K_pad, 512), (1, 512) block-diag head layer 1
    W2_ref, b2_ref,        # (512, E),    (1, E)    block-diag head layer 2 ∘ shared
    dW1_ref, db1_ref,      # (E, 256),    (1, 256)  decoder layer 1
    dW2_ref, db2_ref,      # (256, O_pad),(1, O_pad) decoder layer 2 (lane-padded cols)
    shared_ref,            # (TB, E)   f32
    recon_ref,             # (TB, O_pad) f32
):
    f32 = jnp.float32
    mxu = x_ref.dtype

    # fused 5-head encoder, layer 1 (block-diagonal weights)
    h = jnp.dot(x_ref[...], W1_ref[...], preferred_element_type=f32) + b1_ref[...]
    h = jnp.maximum(h, 0.0)

    # layer 2 + shared-embedding layer (pre-folded): output IS the shared embedding
    shared = jnp.dot(h.astype(mxu), W2_ref[...], preferred_element_type=f32) + b2_ref[...]
    shared_ref[...] = shared

    # decoder: Linear -> ReLU -> Linear
    d = jnp.dot(shared.astype(mxu), dW1_ref[...], preferred_element_type=f32) + db1_ref[...]
    d = jnp.maximum(d, 0.0)
    recon_ref[...] = jnp.dot(d.astype(mxu), dW2_ref[...], preferred_element_type=f32) + db2_ref[...]


# ----------------------------------------------------------------------------
# Parameter packing: per-head weights -> block-diagonal fused weights, with the
# shared-embedding layer folded into layer 2, lane-dense padding on K and the
# reconstruction output, and optional bf16 MXU-operand dtype.
# ----------------------------------------------------------------------------
def pack_params(params, input_dims, hidden_dims, embedding_dim, *, use_bf16=True):
    (lW1, lb1, lW2, lb2, nW1, nb1, nW2, nb2, hW1, hb1, hW2, hb2,
     aW1, ab1, aW2, ab2, cW1, cb1, cW2, cb2, eW, eb,
     dW1, db1, dW2, db2) = params

    head_W1 = [lW1, nW1, hW1, aW1, cW1]
    head_b1 = [lb1, nb1, hb1, ab1, cb1]
    head_W2 = [lW2, nW2, hW2, aW2, cW2]
    head_b2 = [lb2, nb2, hb2, ab2, cb2]

    K_total = sum(input_dims)                 # 112
    K_pad = _round_up(K_total, 128)           # 128
    H_total = sum(hidden_dims)                # 512
    E = embedding_dim                         # 32
    E5 = 5 * E                                # 160

    # block-diagonal layer 1: (K_pad, H_total); padded x columns hit zero rows
    W1_blk = jnp.zeros((K_pad, H_total), jnp.float32)
    r = c = 0
    for W, k, h in zip(head_W1, input_dims, hidden_dims):
        W1_blk = W1_blk.at[r:r + k, c:c + h].set(W)
        r += k
        c += h
    b1_cat = jnp.concatenate(head_b1, axis=1)                 # (1, 512)

    # block-diagonal layer 2: (H_total, 5E); output is the concat of embeddings
    W2_blk = jnp.zeros((H_total, E5), jnp.float32)
    r = c = 0
    for W, h in zip(head_W2, hidden_dims):
        W2_blk = W2_blk.at[r:r + h, c:c + E].set(W)
        r += h
        c += E
    b2_cat = jnp.concatenate(head_b2, axis=1)                  # (1, 160)

    # fold the shared-embedding linear layer into layer 2 (exact composition):
    # shared = (h @ W2_blk + b2_cat) @ eW + eb = h @ (W2_blk @ eW) + (b2_cat @ eW + eb)
    W2p = W2_blk @ eW                                           # (512, E)
    b2p = b2_cat @ eW + eb                                      # (1, E)

    # decoder: pad layer-2 output columns to a lane-dense multiple of 128
    D_hidden = dW1.shape[1]                                     # 256
    out_total = dW2.shape[1]                                    # 112
    O_pad = _round_up(out_total, 128)                           # 128
    dW2_pad = jnp.zeros((D_hidden, O_pad), jnp.float32).at[:, :out_total].set(dW2)
    db2_pad = jnp.zeros((1, O_pad), jnp.float32).at[:, :out_total].set(db2)

    mxu_dtype = jnp.bfloat16 if use_bf16 else jnp.float32
    packed = (W1_blk.astype(mxu_dtype), b1_cat,
              W2p.astype(mxu_dtype), b2p,
              dW1.astype(mxu_dtype), db1,
              dW2_pad.astype(mxu_dtype), db2_pad)
    return packed, K_total, out_total


# ----------------------------------------------------------------------------
# Wrapper: fused concat+pad of inputs, one pallas_call with a parallel batch
# grid, explicit VMEM budget.
# ----------------------------------------------------------------------------
def multi_head_autoencoder_forward(inputs, packed, embedding_dim, out_total,
                                   *, batch_block=1024):
    parts = [inputs["league_club"], inputs["national_club"], inputs["league_history"],
             inputs["attributes"], inputs["categorical"]]
    B = parts[0].shape[0]
    K = sum(p.shape[1] for p in parts)                         # 112

    W1 = packed[0]
    K_pad, H = W1.shape                                        # (128, 512)
    E = packed[2].shape[1]                                     # 32 (natural width)
    D_hidden = packed[4].shape[1]                              # 256
    O_pad = packed[6].shape[1]                                 # 128
    x_dtype = W1.dtype

    # batch tiling: sublane-aligned tile; if the whole batch fits in one tile,
    # split it in two so the parallel axis can use both v7x TensorCores.
    TB = min(batch_block, _round_up(B, 8))
    if B <= TB:
        half = _round_up(-(-B // 2), 8)
        if 8 <= half < TB:
            TB = half
    B_pad = _round_up(B, TB)

    # fused concat + K-padding (single concatenate), then a single batch-row pad
    if K_pad > K:
        parts = parts + [jnp.zeros((B, K_pad - K), parts[0].dtype)]
    x = jnp.concatenate(parts, axis=1).astype(x_dtype)
    if B_pad > B:
        x = jnp.pad(x, ((0, B_pad - B), (0, 0)))

    grid = (B_pad // TB,)

    def bmap(i):
        return (i, 0)

    def wmap(i):            # weights/biases stay resident across batch tiles
        return (0, 0)

    in_specs = [pl.BlockSpec((TB, K_pad), bmap)] + \
               [pl.BlockSpec(p.shape, wmap) for p in packed]
    out_specs = (pl.BlockSpec((TB, E), bmap),
                 pl.BlockSpec((TB, O_pad), bmap))
    out_shape = (jax.ShapeDtypeStruct((B_pad, E), jnp.float32),
                 jax.ShapeDtypeStruct((B_pad, O_pad), jnp.float32))

    # explicit VMEM budget: double-buffered activations/outputs/weights plus
    # f32 intermediates, with ~2x headroom; clamped to fit all generations
    # (v5e default scoped 16 MiB, v7x physical 64 MiB).
    w_bytes = sum(int(p.size) * p.dtype.itemsize for p in packed)
    act_bytes = TB * K_pad * x_dtype.itemsize
    out_bytes = TB * (E + O_pad) * 4
    inter_bytes = TB * (H + D_hidden + E + O_pad) * 4
    est = 2 * (w_bytes + act_bytes + out_bytes) + inter_bytes
    vmem_limit = int(min(max(2 * est, 16 << 20), 64 << 20))

    shared_pad, recon_pad = pl.pallas_call(
        _mha_kernel,
        out_shape=out_shape,
        grid=grid,
        in_specs=in_specs,
        out_specs=out_specs,
        compiler_params=pltpu.CompilerParams(
            dimension_semantics=("parallel",),
            vmem_limit_bytes=vmem_limit),
    )(x, *packed)

    return shared_pad[:B], recon_pad[:B, :out_total]


# ----------------------------------------------------------------------------
# Parameter init (mimics PyTorch nn.Linear default init; W pre-transposed).
# ----------------------------------------------------------------------------
def _init_linear(key, fan_in, fan_out):
    kw, kb = jax.random.split(key)
    bound = 1.0 / jnp.sqrt(jnp.float32(fan_in))
    W = jax.random.uniform(kw, (fan_in, fan_out), jnp.float32, -bound, bound)
    b = jax.random.uniform(kb, (1, fan_out), jnp.float32, -bound, bound)
    return W, b


def make_params(key, input_sizes, embedding_dim):
    keys = jax.random.split(key, 12)
    params = []
    head_hidden = {
        "League Club History": 128,
        "National Club History": 128,
        "League History": 128,
        "Attributes": 64,
        "Categorical": 64,
    }
    names = ["League Club History", "National Club History", "League History",
             "Attributes", "Categorical"]
    ki = 0
    for name in names:
        h = head_hidden[name]
        W1, b1 = _init_linear(keys[ki], input_sizes[name], h); ki += 1
        W2, b2 = _init_linear(keys[ki], h, embedding_dim); ki += 1
        params += [W1, b1, W2, b2]
    We, be = _init_linear(keys[ki], 5 * embedding_dim, embedding_dim); ki += 1
    params += [We, be]
    total = sum(input_sizes.values())
    Wd1, bd1 = _init_linear(keys[ki], embedding_dim, 256); ki += 1
    Wd2, bd2 = _init_linear(keys[ki], 256, total); ki += 1
    params += [Wd1, bd1, Wd2, bd2]
    return tuple(params)


def reference_forward(inputs, params):
    """Pure-JAX reference (mirrors the PyTorch module) for correctness check."""
    (lW1, lb1, lW2, lb2, nW1, nb1, nW2, nb2, hW1, hb1, hW2, hb2,
     aW1, ab1, aW2, ab2, cW1, cb1, cW2, cb2, eW, eb,
     dW1, db1, dW2, db2) = params

    def head(x, W1, b1, W2, b2):
        return jnp.maximum(x @ W1 + b1, 0.0) @ W2 + b2

    embs = [
        head(inputs["league_club"], lW1, lb1, lW2, lb2),
        head(inputs["national_club"], nW1, nb1, nW2, nb2),
        head(inputs["league_history"], hW1, hb1, hW2, hb2),
        head(inputs["attributes"], aW1, ab1, aW2, ab2),
        head(inputs["categorical"], cW1, cb1, cW2, cb2),
    ]
    combined = jnp.concatenate(embs, axis=1)
    shared = combined @ eW + eb
    recon = jnp.maximum(shared @ dW1 + db1, 0.0) @ dW2 + db2
    return shared, recon


if __name__ == "__main__":
    input_sizes = {
        "League Club History": 24,
        "National Club History": 16,
        "League History": 20,
        "Attributes": 40,
        "Categorical": 12,
    }
    hidden_sizes = [128, 128, 128, 64, 64]
    input_dims = [input_sizes["League Club History"], input_sizes["National Club History"],
                  input_sizes["League History"], input_sizes["Attributes"],
                  input_sizes["Categorical"]]
    embedding_dim = 32
    batch = 8

    key = jax.random.PRNGKey(0)
    k_in, k_params = jax.random.split(key)
    kis = jax.random.split(k_in, 5)

    inputs = {
        "league_club": jax.random.normal(kis[0], (batch, input_dims[0]), jnp.float32),
        "national_club": jax.random.normal(kis[1], (batch, input_dims[1]), jnp.float32),
        "league_history": jax.random.normal(kis[2], (batch, input_dims[2]), jnp.float32),
        "attributes": jax.random.normal(kis[3], (batch, input_dims[3]), jnp.float32),
        "categorical": jax.random.normal(kis[4], (batch, input_dims[4]), jnp.float32),
    }

    params = make_params(k_params, input_sizes, embedding_dim)
    shared_ref_out, recon_ref_out = reference_forward(inputs, params)
    out_width = sum(input_sizes.values())

    # 1) strict f32 path: verifies fold + padding scheme are (numerically) exact
    packed_f32, _, out_total = pack_params(params, input_dims, hidden_sizes,
                                           embedding_dim, use_bf16=False)
    shared32, recon32 = multi_head_autoencoder_forward(inputs, packed_f32,
                                                       embedding_dim, out_total)
    jax.block_until_ready((shared32, recon32))
    assert shared32.shape == (batch, embedding_dim)
    assert recon32.shape == (batch, out_width)
    assert jnp.allclose(shared32, shared_ref_out, atol=1e-4, rtol=1e-4)
    assert jnp.allclose(recon32, recon_ref_out, atol=1e-4, rtol=1e-4)

    # 2) default bf16-MXU fast path (f32 accumulation) -- relaxed tolerance
    packed_bf16, _, _ = pack_params(params, input_dims, hidden_sizes,
                                    embedding_dim, use_bf16=True)
    shared16, recon16 = multi_head_autoencoder_forward(inputs, packed_bf16,
                                                       embedding_dim, out_total)
    jax.block_until_ready((shared16, recon16))
    assert jnp.allclose(shared16, shared_ref_out, atol=2e-2, rtol=2e-2)
    assert jnp.allclose(recon16, recon_ref_out, atol=2e-2, rtol=2e-2)

    # 3) non-tile-aligned batch: exercises batch padding + grid >= 2 (megacore) path
    batch2 = 300
    kis2 = jax.random.split(jax.random.PRNGKey(1), 5)
    inputs2 = {
        "league_club": jax.random.normal(kis2[0], (batch2, input_dims[0]), jnp.float32),
        "national_club": jax.random.normal(kis2[1], (batch2, input_dims[1]), jnp.float32),
        "league_history": jax.random.normal(kis2[2], (batch2, input_dims[2]), jnp.float32),
        "attributes": jax.random.normal(kis2[3], (batch2, input_dims[3]), jnp.float32),
        "categorical": jax.random.normal(kis2[4], (batch2, input_dims[4]), jnp.float32),
    }
    shared2_ref, recon2_ref = reference_forward(inputs2, params)
    shared2, recon2 = multi_head_autoencoder_forward(inputs2, packed_bf16,
                                                     embedding_dim, out_total)
    jax.block_until_ready((shared2, recon2))
    assert shared2.shape == (batch2, embedding_dim)
    assert recon2.shape == (batch2, out_width)
    assert jnp.allclose(shared2, shared2_ref, atol=2e-2, rtol=2e-2)
    assert jnp.allclose(recon2, recon2_ref, atol=2e-2, rtol=2e-2)

    print("KERNEL_OK")
</pallas_src>

<mosaic_0001>
module attributes {stable_mosaic.version = 11 : i64} {
  func.func @_mha_kernel(%arg0: i32, %arg1: memref<8x128xf32, #tpu.memory_space<vmem>>, %arg2: memref<128x512xf32, #tpu.memory_space<vmem>>, %arg3: memref<1x512xf32, #tpu.memory_space<vmem>>, %arg4: memref<512x32xf32, #tpu.memory_space<vmem>>, %arg5: memref<1x32xf32, #tpu.memory_space<vmem>>, %arg6: memref<32x256xf32, #tpu.memory_space<vmem>>, %arg7: memref<1x256xf32, #tpu.memory_space<vmem>>, %arg8: memref<256x128xf32, #tpu.memory_space<vmem>>, %arg9: memref<1x128xf32, #tpu.memory_space<vmem>>, %arg10: memref<8x32xf32, #tpu.memory_space<vmem>>, %arg11: memref<8x128xf32, #tpu.memory_space<vmem>>) attributes {dimension_semantics = [#tpu.dimension_semantics<parallel>], iteration_bounds = array<i64: 1>, scalar_prefetch = 0 : i64, scratch_operands = 0 : i64, tpu.core_type = #tpu.core_type<tc>, window_params = [{transform_indices = @transform_0, window_bounds = array<i64: 8, 128>}, {pipeline_mode = #tpu.pipeline_mode<synchronous>, transform_indices = @transform_1, window_bounds = array<i64: 128, 512>}, {pipeline_mode = #tpu.pipeline_mode<synchronous>, transform_indices = @transform_2, window_bounds = array<i64: 1, 512>}, {pipeline_mode = #tpu.pipeline_mode<synchronous>, transform_indices = @transform_3, window_bounds = array<i64: 512, 32>}, {pipeline_mode = #tpu.pipeline_mode<synchronous>, transform_indices = @transform_4, window_bounds = array<i64: 1, 32>}, {pipeline_mode = #tpu.pipeline_mode<synchronous>, transform_indices = @transform_5, window_bounds = array<i64: 32, 256>}, {pipeline_mode = #tpu.pipeline_mode<synchronous>, transform_indices = @transform_6, window_bounds = array<i64: 1, 256>}, {pipeline_mode = #tpu.pipeline_mode<synchronous>, transform_indices = @transform_7, window_bounds = array<i64: 256, 128>}, {pipeline_mode = #tpu.pipeline_mode<synchronous>, transform_indices = @transform_8, window_bounds = array<i64: 1, 128>}, {transform_indices = @transform_9, window_bounds = array<i64: 8, 32>}, {transform_indices = @transform_10, window_bounds = array<i64: 8, 128>}]} {
    %c0 = arith.constant 0 : index
    %c0_0 = arith.constant 0 : index
    %0 = vector.load %arg1[%c0, %c0_0] : memref<8x128xf32, #tpu.memory_space<vmem>>, vector<8x128xf32>
    %c0_1 = arith.constant 0 : index
    %c0_2 = arith.constant 0 : index
    %1 = vector.load %arg2[%c0_1, %c0_2] : memref<128x512xf32, #tpu.memory_space<vmem>>, vector<128x512xf32>
    %cst = arith.constant dense<0.000000e+00> : vector<8x512xf32>
    %2 = tpu.matmul %0, %1, %cst {dimension_numbers = #tpu.dot_dimension_numbers<[1], [0], [0], [1], [0, 0, 1, 1], [], []>} : vector<8x128xf32>, vector<128x512xf32>, vector<8x512xf32> -> vector<8x512xf32>
    %c0_3 = arith.constant 0 : index
    %c0_4 = arith.constant 0 : index
    %3 = vector.load %arg3[%c0_3, %c0_4] : memref<1x512xf32, #tpu.memory_space<vmem>>, vector<1x512xf32>
    %4 = vector.broadcast %3 : vector<1x512xf32> to vector<8x512xf32>
    %5 = arith.addf %2, %4 : vector<8x512xf32>
    %cst_5 = arith.constant 0.000000e+00 : f32
    %6 = vector.broadcast %cst_5 : f32 to vector<8x512xf32>
    %7 = arith.maximumf %5, %6 : vector<8x512xf32>
    %c0_6 = arith.constant 0 : index
    %c0_7 = arith.constant 0 : index
    %8 = vector.load %arg4[%c0_6, %c0_7] : memref<512x32xf32, #tpu.memory_space<vmem>>, vector<512x32xf32>
    %cst_8 = arith.constant dense<0.000000e+00> : vector<8x32xf32>
    %9 = tpu.matmul %7, %8, %cst_8 {dimension_numbers = #tpu.dot_dimension_numbers<[1], [0], [0], [1], [0, 0, 1, 1], [], []>} : vector<8x512xf32>, vector<512x32xf32>, vector<8x32xf32> -> vector<8x32xf32>
    %c0_9 = arith.constant 0 : index
    %c0_10 = arith.constant 0 : index
    %10 = vector.load %arg5[%c0_9, %c0_10] : memref<1x32xf32, #tpu.memory_space<vmem>>, vector<1x32xf32>
    %11 = vector.broadcast %10 : vector<1x32xf32> to vector<8x32xf32>
    %12 = arith.addf %9, %11 : vector<8x32xf32>
    %c0_11 = arith.constant 0 : index
    %c0_12 = arith.constant 0 : index
    %13 = vector.load %arg10[%c0_11, %c0_12] : memref<8x32xf32, #tpu.memory_space<vmem>>, vector<8x32xf32>
    tpu.vector_store %arg10[%c0_11, %c0_12], %12 {strides = array<i32>} : memref<8x32xf32, #tpu.memory_space<vmem>>, vector<8x32xf32>,
    %c0_13 = arith.constant 0 : index
    %c0_14 = arith.constant 0 : index
    %14 = vector.load %arg6[%c0_13, %c0_14] : memref<32x256xf32, #tpu.memory_space<vmem>>, vector<32x256xf32>
    %cst_15 = arith.constant dense<0.000000e+00> : vector<8x256xf32>
    %15 = tpu.matmul %12, %14, %cst_15 {dimension_numbers = #tpu.dot_dimension_numbers<[1], [0], [0], [1], [0, 0, 1, 1], [], []>} : vector<8x32xf32>, vector<32x256xf32>, vector<8x256xf32> -> vector<8x256xf32>
    %c0_16 = arith.constant 0 : index
    %c0_17 = arith.constant 0 : index
    %16 = vector.load %arg7[%c0_16, %c0_17] : memref<1x256xf32, #tpu.memory_space<vmem>>, vector<1x256xf32>
    %17 = vector.broadcast %16 : vector<1x256xf32> to vector<8x256xf32>
    %18 = arith.addf %15, %17 : vector<8x256xf32>
    %cst_18 = arith.constant 0.000000e+00 : f32
    %19 = vector.broadcast %cst_18 : f32 to vector<8x256xf32>
    %20 = arith.maximumf %18, %19 : vector<8x256xf32>
    %c0_19 = arith.constant 0 : index
    %c0_20 = arith.constant 0 : index
    %21 = vector.load %arg8[%c0_19, %c0_20] : memref<256x128xf32, #tpu.memory_space<vmem>>, vector<256x128xf32>
    %cst_21 = arith.constant dense<0.000000e+00> : vector<8x128xf32>
    %22 = tpu.matmul %20, %21, %cst_21 {dimension_numbers = #tpu.dot_dimension_numbers<[1], [0], [0], [1], [0, 0, 1, 1], [], []>} : vector<8x256xf32>, vector<256x128xf32>, vector<8x128xf32> -> vector<8x128xf32>
    %c0_22 = arith.constant 0 : index
    %c0_23 = arith.constant 0 : index
    %23 = vector.load %arg9[%c0_22, %c0_23] : memref<1x128xf32, #tpu.memory_space<vmem>>, vector<1x128xf32>
    %24 = vector.broadcast %23 : vector<1x128xf32> to vector<8x128xf32>
    %25 = arith.addf %22, %24 : vector<8x128xf32>
    %c0_24 = arith.constant 0 : index
    %c0_25 = arith.constant 0 : index
    %26 = vector.load %arg11[%c0_24, %c0_25] : memref<8x128xf32, #tpu.memory_space<vmem>>, vector<8x128xf32>
    tpu.vector_store %arg11[%c0_24, %c0_25], %25 {strides = array<i32>} : memref<8x128xf32, #tpu.memory_space<vmem>>, vector<8x128xf32>,
    return
  }
  func.func @transform_0(%arg0: i32) -> (i32, i32) {
    %c0_i32 = arith.constant 0 : i32
    %c0_i32_0 = arith.constant 0 : i32
    return %arg0, %c0_i32 : i32, i32
  }
  func.func @transform_1(%arg0: i32) -> (i32, i32) {
    %c0_i32 = arith.constant 0 : i32
    %c0_i32_0 = arith.constant 0 : i32
    %c0_i32_1 = arith.constant 0 : i32
    return %c0_i32, %c0_i32_0 : i32, i32
  }
  func.func @transform_2(%arg0: i32) -> (i32, i32) {
    %c0_i32 = arith.constant 0 : i32
    %c0_i32_0 = arith.constant 0 : i32
    %c0_i32_1 = arith.constant 0 : i32
    return %c0_i32, %c0_i32_0 : i32, i32
  }
  func.func @transform_3(%arg0: i32) -> (i32, i32) {
    %c0_i32 = arith.constant 0 : i32
    %c0_i32_0 = arith.constant 0 : i32
    %c0_i32_1 = arith.constant 0 : i32
    return %c0_i32, %c0_i32_0 : i32, i32
  }
  func.func @transform_4(%arg0: i32) -> (i32, i32) {
    %c0_i32 = arith.constant 0 : i32
    %c0_i32_0 = arith.constant 0 : i32
    %c0_i32_1 = arith.constant 0 : i32
    return %c0_i32, %c0_i32_0 : i32, i32
  }
  func.func @transform_5(%arg0: i32) -> (i32, i32) {
    %c0_i32 = arith.constant 0 : i32
    %c0_i32_0 = arith.constant 0 : i32
    %c0_i32_1 = arith.constant 0 : i32
    return %c0_i32, %c0_i32_0 : i32, i32
  }
  func.func @transform_6(%arg0: i32) -> (i32, i32) {
    %c0_i32 = arith.constant 0 : i32
    %c0_i32_0 = arith.constant 0 : i32
    %c0_i32_1 = arith.constant 0 : i32
    return %c0_i32, %c0_i32_0 : i32, i32
  }
  func.func @transform_7(%arg0: i32) -> (i32, i32) {
    %c0_i32 = arith.constant 0 : i32
    %c0_i32_0 = arith.constant 0 : i32
    %c0_i32_1 = arith.constant 0 : i32
    return %c0_i32, %c0_i32_0 : i32, i32
  }
  func.func @transform_8(%arg0: i32) -> (i32, i32) {
    %c0_i32 = arith.constant 0 : i32
    %c0_i32_0 = arith.constant 0 : i32
    %c0_i32_1 = arith.constant 0 : i32
    return %c0_i32, %c0_i32_0 : i32, i32
  }
  func.func @transform_9(%arg0: i32) -> (i32, i32) {
    %c0_i32 = arith.constant 0 : i32
    %c0_i32_0 = arith.constant 0 : i32
    return %arg0, %c0_i32 : i32, i32
  }
  func.func @transform_10(%arg0: i32) -> (i32, i32) {
    %c0_i32 = arith.constant 0 : i32
    %c0_i32_0 = arith.constant 0 : i32
    return %arg0, %c0_i32 : i32, i32
  }
}

</mosaic_0001>

<bundles_post_ra>
// kernel: tpu_custom_call.1
= control target key start
LH: loop header
LB: loop body
LE: loop exit
PB: predicated region body
PF: predicated region fallthrough
CT: control target
= control target key end

     0   :  { %16 = vsyncpa [#allocation3], 0  ;;  %s1622_s0 = inlined_call_operand.vmem [shape: f32[8,128], index: 0, kind: input, shape index: {}]   ;;  %s1623_s1 = inlined_call_operand.vmem [shape: f32[128,512], index: 1, kind: input, shape index: {}]   ;;  %s1624_s2 = inlined_call_operand.vmem [shape: f32[1,512], index: 2, kind: input, shape index: {}]   ;;  %s1625_s3 = inlined_call_operand.vmem [shape: f32[512,32], index: 3, kind: input, shape index: {}]   ;;  %s1626_s4 = inlined_call_operand.vmem [shape: f32[1,32], index: 4, kind: input, shape index: {}]   ;;  %s1627_s5 = inlined_call_operand.vmem [shape: f32[32,256], index: 5, kind: input, shape index: {}]   ;;  %s1628_s6 = inlined_call_operand.vmem [shape: f32[1,256], index: 6, kind: input, shape index: {}]   ;;  %s1629_s7 = inlined_call_operand.hbm [shape: f32[256,128], index: 7, kind: input, shape index: {}]   ;;  %s1630_s8 = inlined_call_operand.vmem [shape: f32[1,128], index: 8, kind: input, shape index: {}]   ;;  %s1631_s9 = inlined_call_operand.hbm [shape: f32[8,32], index: 9, kind: output, shape index: {0}]   ;;  %s1632_s10 = inlined_call_operand.hbm [shape: f32[8,128], index: 10, kind: output, shape index: {1}]  }
   0x1   :  { %17 = vsyncpa [#allocation4], 0 }
   0x2   :  { %18 = vsyncpa [#allocation7], 0  ;;  %s1085_s13 = smov [#allocation2]   ;;  %s1013_s17 = scalar_lea.hbm %s1629_s7, 4096 }
   0x3   :  { %s38_s14 = sshll.u32 %s1085_s13, 4  ;;  %p1014_p0 = scmp.ne.s32.totalorder %s1629_s7, %s1013_s17  ;;  %s39_s14 = int_to_ptr.vmem [resolvable:$true] %s38_s14 }
   0x4   :  { %p1017_p1 = scmp.lt.u32.totalorder %s1013_s17, %s1629_s7 }
   0x6   :  { %p1019_p2 = pnand %p1017_p1, %p1014_p0 }
   0x8   :  { %1022 = shalt.err (!%p1019_p2)
}
   0x9   :  { %s1023_s22 = scalar_lea.vmem %s39_s14, 4096  ;;  %p1028_p4 = scmp.lt.s32.totalorder %s39_s14, %s39_s14 }
   0xa   :  { %p1024_p3 = scmp.ne.s32.totalorder %s39_s14, %s1023_s22  ;;  %p1029_p5 = scmp.lt.s32.totalorder %s1023_s22, %s1023_s22 }
   0xc   :  { %p1030_p6 = por %p1029_p5, %p1028_p4 }
   0xe   :  { %p1031_p7 = pnand %p1030_p6, %p1024_p3 }
  0x10   :  { %1034 = shalt.err (!%p1031_p7)
}
  0x11   :  { %s1086_s23 = smov 128   ;;  %s1087_s24 = smov 8  }
  0x12   :  { %44 = dma.hbm_to_vmem [thread:$0]  %s1629_s7, 4096, %s39_s14, [#allocation3], %s1086_s23, %s1086_s23, %s1087_s24  }
  0x13   :  { %1079 = dma.done.wait [#allocation3], 4096  }
  0x14   :  { %1080 = vsyncadd [#allocation3], 4294963200  ;;  %v1088_v0 = vmov 0.0   ;;  %v52_v1 = vld [vmem:[%s1623_s1 + $0x8] sm:$0xff]  ;;  %v54_v3 = vld [vmem:[%s1623_s1 + $0x18] sm:$0xff]  ;;  %vm494_vm0 = vcmask 261120  }
  0x15   :  { %201 = vmatprep.mubr.f32.mxu0 %v1088_v0  ;;  %272 = vmatprep.mubr.f32.mxu1 %v1088_v0  ;;  %v56_v2 = vld [vmem:[%s1623_s1 + $0x28] sm:$0xff]  ;;  %v58_v5 = vld [vmem:[%s1623_s1 + $0x38] sm:$0xff]  ;;  %v51_v6 = vld [vmem:[%s1623_s1] sm:$0xff]  ;;  %s1089_s17 = smov [#allocation5]  }
  0x16   :  { %v839_v4 = vpack.c.bf16 %v56_v2, %v52_v1  ;;  %v55_v7 = vld [vmem:[%s1623_s1 + $0x20] sm:$0xff]  ;;  %v871_v8 = vpack.c.bf16 %v58_v5, %v54_v3  ;;  %v53_v10 = vld [vmem:[%s1623_s1 + $0x10] sm:$0xff]  ;;  %v60_v12 = vld [vmem:[%s1623_s1 + $0x48] sm:$0xff]  ;;  %s708_s18 = sshll.u32 %s1089_s17, 4  ;;  %s709_s18 = int_to_ptr.vmem [resolvable:$true] %s708_s18 }
  0x17   :  { %v841_v9 = vpack.c.bf16 %v55_v7, %v51_v6  ;;  %v57_v11 = vld [vmem:[%s1623_s1 + $0x30] sm:$0xff]  ;;  %v64_v14 = vld [vmem:[%s1623_s1 + $0x68] sm:$0xff]  ;;  %v62_v15 = vld [vmem:[%s1623_s1 + $0x58] sm:$0xff]  ;;  %s1035_s19 = scalar_lea.vmem %s709_s18, 128  ;;  %p1040_p9 = scmp.lt.s32.totalorder %s709_s18, %s709_s18 }
  0x18   :  { %840 = vmatprep.subr.bf16.mxu0 %v839_v4  ;;  %v873_v13 = vpack.c.bf16 %v57_v11, %v53_v10  ;;  %v66_v16 = vld [vmem:[%s1623_s1 + $0x78] sm:$0xff]  ;;  %872 = vmatprep.subr.bf16.mxu1 %v871_v8  ;;  %v843_v17 = vpack.c.bf16 %v64_v14, %v60_v12  ;;  %v59_v19 = vld [vmem:[%s1623_s1 + $0x40] sm:$0xff]  ;;  %v61_v21 = vld [vmem:[%s1623_s1 + $0x50] sm:$0xff]  ;;  %p1036_p8 = scmp.ne.s32.totalorder %s709_s18, %s1035_s19  ;;  %p1041_p10 = scmp.lt.s32.totalorder %s1035_s19, %s1035_s19 }
  0x19   :  { %842 = vmatpush1.bf16.msra.mxu0 %v841_v9  ;;  %v875_v18 = vpack.c.bf16 %v66_v16, %v62_v15  ;;  %v63_v20 = vld [vmem:[%s1623_s1 + $0x60] sm:$0xff]  ;;  %v65_v23 = vld [vmem:[%s1623_s1 + $0x70] sm:$0xff]  ;;  %v68_v24 = vld [vmem:[%s1623_s1 + $0x88] sm:$0xff] }
  0x1a   :  { %874 = vmatpush1.bf16.msra.mxu1 %v873_v13  ;;  %v845_v22 = vpack.c.bf16 %v63_v20, %v59_v19  ;;  %v72_v25 = vld [vmem:[%s1623_s1 + $0xa8] sm:$0xff]  ;;  %844 = vmatprep.subr.bf16.mxu0 %v843_v17  ;;  %v877_v26 = vpack.c.bf16 %v65_v23, %v61_v21  ;;  %v70_v28 = vld [vmem:[%s1623_s1 + $0x98] sm:$0xff]  ;;  %v67_v30 = vld [vmem:[%s1623_s1 + $0x80] sm:$0xff]  ;;  %p1042_p11 = por %p1041_p10, %p1040_p9 }
  0x1b   :  { %876 = vmatprep.subr.bf16.mxu1 %v875_v18  ;;  %v847_v27 = vpack.c.bf16 %v72_v25, %v68_v24  ;;  %v74_v29 = vld [vmem:[%s1623_s1 + $0xb8] sm:$0xff]  ;;  %v71_v32 = vld [vmem:[%s1623_s1 + $0xa0] sm:$0xff]  ;;  %v69_v33 = vld [vmem:[%s1623_s1 + $0x90] sm:$0xff] }
  0x1c   :  { %v879_v31 = vpack.c.bf16 %v74_v29, %v70_v28  ;;  %v73_v34 = vld [vmem:[%s1623_s1 + $0xb0] sm:$0xff]  ;;  %v849_v35 = vpack.c.bf16 %v71_v32, %v67_v30  ;;  %v76_v36 = vld [vmem:[%s1623_s1 + $0xc8] sm:$0xff]  ;;  %v78_v38 = vld [vmem:[%s1623_s1 + $0xd8] sm:$0xff]  ;;  %p1043_p12 = pnand %p1042_p11, %p1036_p8 }
  0x1d   :  { %846 = vmatpush1.bf16.msra.mxu0 %v845_v22  ;;  %v80_v37 = vld [vmem:[%s1623_s1 + $0xe8] sm:$0xff]  ;;  %v881_v39 = vpack.c.bf16 %v73_v34, %v69_v33  ;;  %v82_v41 = vld [vmem:[%s1623_s1 + $0xf8] sm:$0xff]  ;;  %v75_v42 = vld [vmem:[%s1623_s1 + $0xc0] sm:$0xff] }
  0x1e   :  { %878 = vmatpush1.bf16.msra.mxu1 %v877_v26  ;;  %848 = vmatprep.subr.bf16.mxu0 %v847_v27  ;;  %v851_v40 = vpack.c.bf16 %v80_v37, %v76_v36  ;;  %v79_v43 = vld [vmem:[%s1623_s1 + $0xe0] sm:$0xff]  ;;  %v883_v44 = vpack.c.bf16 %v82_v41, %v78_v38  ;;  %v77_v45 = vld [vmem:[%s1623_s1 + $0xd0] sm:$0xff]  ;;  %v84_v47 = vld [vmem:[%s1623_s1 + $0x108] sm:$0xff] }
  0x1f   :  { %880 = vmatprep.subr.bf16.mxu1 %v879_v31  ;;  %v81_v46 = vld [vmem:[%s1623_s1 + $0xf0] sm:$0xff]  ;;  %v88_v48 = vld [vmem:[%s1623_s1 + $0x128] sm:$0xff]  ;;  %v86_v49 = vld [vmem:[%s1623_s1 + $0x118] sm:$0xff]  ;;  %v853_v51 = vpack.c.bf16 %v79_v43, %v75_v42 }
  0x20   :  { %v90_v50 = vld [vmem:[%s1623_s1 + $0x138] sm:$0xff]  ;;  %v885_v52 = vpack.c.bf16 %v81_v46, %v77_v45  ;;  %v855_v53 = vpack.c.bf16 %v88_v48, %v84_v47  ;;  %v83_v54 = vld [vmem:[%s1623_s1 + $0x100] sm:$0xff]  ;;  %v85_v56 = vld [vmem:[%s1623_s1 + $0x110] sm:$0xff] }
  0x21   :  { %850 = vmatpush1.bf16.msra.mxu0 %v849_v35  ;;  %v87_v55 = vld [vmem:[%s1623_s1 + $0x120] sm:$0xff]  ;;  %v887_v57 = vpack.c.bf16 %v90_v50, %v86_v49  ;;  %v89_v58 = vld [vmem:[%s1623_s1 + $0x130] sm:$0xff]  ;;  %v92_v59 = vld [vmem:[%s1623_s1 + $0x148] sm:$0xff] }
  0x22   :  { %882 = vmatpush1.bf16.msra.mxu1 %v881_v39  ;;  %852 = vmatprep.subr.bf16.mxu0 %v851_v40  ;;  %v96_v60 = vld [vmem:[%s1623_s1 + $0x168] sm:$0xff]  ;;  %v94_v61 = vld [vmem:[%s1623_s1 + $0x158] sm:$0xff]  ;;  %v857_v63 = vpack.c.bf16 %v87_v55, %v83_v54  ;;  %v889_v1 = vpack.c.bf16 %v89_v58, %v85_v56  ;;  %v91_v3 = vld [vmem:[%s1623_s1 + $0x140] sm:$0xff] }
  0x23   :  { %884 = vmatprep.subr.bf16.mxu1 %v883_v44  ;;  %v98_v62 = vld [vmem:[%s1623_s1 + $0x178] sm:$0xff]  ;;  %v859_v2 = vpack.c.bf16 %v96_v60, %v92_v59  ;;  %v95_v4 = vld [vmem:[%s1623_s1 + $0x160] sm:$0xff]  ;;  %v93_v5 = vld [vmem:[%s1623_s1 + $0x150] sm:$0xff] }
  0x24   :  { %v891_v6 = vpack.c.bf16 %v98_v62, %v94_v61  ;;  %v97_v7 = vld [vmem:[%s1623_s1 + $0x170] sm:$0xff]  ;;  %v100_v8 = vld [vmem:[%s1623_s1 + $0x188] sm:$0xff]  ;;  %v102_v10 = vld [vmem:[%s1623_s1 + $0x198] sm:$0xff]  ;;  %v861_v12 = vpack.c.bf16 %v95_v4, %v91_v3 }
  0x25   :  { %854 = vmatpush1.bf16.msra.mxu0 %v853_v51  ;;  %v104_v9 = vld [vmem:[%s1623_s1 + $0x1a8] sm:$0xff]  ;;  %v106_v11 = vld [vmem:[%s1623_s1 + $0x1b8] sm:$0xff]  ;;  %v893_v13 = vpack.c.bf16 %v97_v7, %v93_v5  ;;  %v99_v15 = vld [vmem:[%s1623_s1 + $0x180] sm:$0xff] }
  0x26   :  { %886 = vmatpush1.bf16.msra.mxu1 %v885_v52  ;;  %856 = vmatprep.subr.bf16.mxu0 %v855_v53  ;;  %v863_v14 = vpack.c.bf16 %v104_v9, %v100_v8  ;;  %v103_v16 = vld [vmem:[%s1623_s1 + $0x1a0] sm:$0xff]  ;;  %v101_v17 = vld [vmem:[%s1623_s1 + $0x190] sm:$0xff]  ;;  %v895_v18 = vpack.c.bf16 %v106_v11, %v102_v10  ;;  %v108_v20 = vld [vmem:[%s1623_s1 + $0x1c8] sm:$0xff] }
  0x27   :  { %888 = vmatprep.subr.bf16.mxu1 %v887_v57  ;;  %v105_v19 = vld [vmem:[%s1623_s1 + $0x1b0] sm:$0xff]  ;;  %v112_v21 = vld [vmem:[%s1623_s1 + $0x1e8] sm:$0xff]  ;;  %v110_v22 = vld [vmem:[%s1623_s1 + $0x1d8] sm:$0xff]  ;;  %v865_v24 = vpack.c.bf16 %v103_v16, %v99_v15 }
  0x28   :  { %v114_v23 = vld [vmem:[%s1623_s1 + $0x1f8] sm:$0xff]  ;;  %v897_v25 = vpack.c.bf16 %v105_v19, %v101_v17  ;;  %v867_v26 = vpack.c.bf16 %v112_v21, %v108_v20  ;;  %v107_v27 = vld [vmem:[%s1623_s1 + $0x1c0] sm:$0xff]  ;;  %v109_v29 = vld [vmem:[%s1623_s1 + $0x1d0] sm:$0xff] }
  0x29   :  { %858 = vmatpush1.bf16.msra.mxu0 %v857_v63  ;;  %v111_v28 = vld [vmem:[%s1623_s1 + $0x1e0] sm:$0xff]  ;;  %v899_v30 = vpack.c.bf16 %v114_v23, %v110_v22  ;;  %v113_v31 = vld [vmem:[%s1623_s1 + $0x1f0] sm:$0xff]  ;;  %v300_v33 = vld [vmem:[%s1625_s3 + $0x88] sm:$0xff] }
  0x2a   :  { %890 = vmatpush1.bf16.msra.mxu1 %v889_v1  ;;  %860 = vmatprep.subr.bf16.mxu0 %v859_v2  ;;  %v299_v32 = vld [vmem:[%s1625_s3 + $0x80] sm:$0xff]  ;;  %v332_v35 = vld [vmem:[%s1625_s3 + $0x188] sm:$0xff]  ;;  %v869_v36 = vpack.c.bf16 %v111_v28, %v107_v27  ;;  %v901_v37 = vpack.c.bf16 %v113_v31, %v109_v29  ;;  %v301_v44 = vld [vmem:[%s1625_s3 + $0x90] sm:$0xff] }
  0x2b   :  { %892 = vmatprep.subr.bf16.mxu1 %v891_v6  ;;  %v331_v34 = vld [vmem:[%s1625_s3 + $0x180] sm:$0xff]  ;;  %v903_v38 = vpack.c.bf16 %v300_v33, %v299_v32  ;;  %v284_v40 = vld [vmem:[%s1625_s3 + $0x8] sm:$0xff]  ;;  %v302_v45 = vld [vmem:[%s1625_s3 + $0x98] sm:$0xff] }
  0x2c   :  { %v283_v39 = vld [vmem:[%s1625_s3] sm:$0xff]  ;;  %v935_v42 = vpack.c.bf16 %v332_v35, %v331_v34  ;;  %v316_v43 = vld [vmem:[%s1625_s3 + $0x108] sm:$0xff]  ;;  %v333_v46 = vld [vmem:[%s1625_s3 + $0x190] sm:$0xff]  ;;  %v907_v51 = vpack.c.bf16 %v302_v45, %v301_v44 }
  0x2d   :  { %862 = vmatpush1.bf16.msra.mxu0 %v861_v12  ;;  %v315_v41 = vld [vmem:[%s1625_s3 + $0x100] sm:$0xff]  ;;  %v334_v47 = vld [vmem:[%s1625_s3 + $0x198] sm:$0xff]  ;;  %v905_v49 = vpack.c.bf16 %v284_v40, %v283_v39  ;;  %v285_v52 = vld [vmem:[%s1625_s3 + $0x10] sm:$0xff] }
  0x2e   :  { %894 = vmatpush1.bf16.msra.mxu1 %v893_v13  ;;  %864 = vmatprep.subr.bf16.mxu0 %v863_v14  ;;  %v50_v48 = vld [vmem:[%s1622_s0] sm:$0xff]  ;;  %v937_v50 = vpack.c.bf16 %v316_v43, %v315_v41  ;;  %v286_v53 = vld [vmem:[%s1625_s3 + $0x18] sm:$0xff]  ;;  %v317_v54 = vld [vmem:[%s1625_s3 + $0x110] sm:$0xff]  ;;  %v939_v55 = vpack.c.bf16 %v334_v47, %v333_v46 }
  0x2f   :  { %896 = vmatprep.subr.bf16.mxu1 %v895_v18  ;;  %v318_v56 = vld [vmem:[%s1625_s3 + $0x118] sm:$0xff]  ;;  %v303_v57 = vld [vmem:[%s1625_s3 + $0xa0] sm:$0xff]  ;;  %v304_v58 = vld [vmem:[%s1625_s3 + $0xa8] sm:$0xff]  ;;  %v909_v61 = vpack.c.bf16 %v286_v53, %v285_v52 }
  0x30   :  { %v335_v59 = vld [vmem:[%s1625_s3 + $0x1a0] sm:$0xff]  ;;  %v336_v60 = vld [vmem:[%s1625_s3 + $0x1a8] sm:$0xff]  ;;  %v941_v62 = vpack.c.bf16 %v318_v56, %v317_v54  ;;  %v911_v63 = vpack.c.bf16 %v304_v58, %v303_v57  ;;  %v305_v6 = vld [vmem:[%s1625_s3 + $0xb0] sm:$0xff] }
  0x31   :  { %866 = vmatpush1.bf16.msra.mxu0 %v865_v24  ;;  %v287_v1 = vld [vmem:[%s1625_s3 + $0x20] sm:$0xff]  ;;  %v288_v2 = vld [vmem:[%s1625_s3 + $0x28] sm:$0xff]  ;;  %v943_v4 = vpack.c.bf16 %v336_v60, %v335_v59  ;;  %v306_v7 = vld [vmem:[%s1625_s3 + $0xb8] sm:$0xff] }
  0x32   :  { %898 = vmatpush1.bf16.msra.mxu1 %v897_v25  ;;  %868 = vmatprep.subr.bf16.mxu0 %v867_v26  ;;  %v319_v3 = vld [vmem:[%s1625_s3 + $0x120] sm:$0xff]  ;;  %v320_v5 = vld [vmem:[%s1625_s3 + $0x128] sm:$0xff]  ;;  %v337_v8 = vld [vmem:[%s1625_s3 + $0x1b0] sm:$0xff]  ;;  %v913_v10 = vpack.c.bf16 %v288_v2, %v287_v1  ;;  %v915_v12 = vpack.c.bf16 %v306_v7, %v305_v6 }
  0x33   :  { %900 = vmatprep.subr.bf16.mxu1 %v899_v30  ;;  %v338_v9 = vld [vmem:[%s1625_s3 + $0x1b8] sm:$0xff]  ;;  %v945_v11 = vpack.c.bf16 %v320_v5, %v319_v3  ;;  %v289_v13 = vld [vmem:[%s1625_s3 + $0x30] sm:$0xff]  ;;  %v307_v18 = vld [vmem:[%s1625_s3 + $0xc0] sm:$0xff]  ;;  %v117_v5 = vlaneseq }
  0x34   :  { %v290_v14 = vld [vmem:[%s1625_s3 + $0x38] sm:$0xff]  ;;  %v321_v15 = vld [vmem:[%s1625_s3 + $0x130] sm:$0xff]  ;;  %v947_v16 = vpack.c.bf16 %v338_v9, %v337_v8  ;;  %v308_v19 = vld [vmem:[%s1625_s3 + $0xc8] sm:$0xff] }
  0x35   :  { %870 = vmatpush1.bf16.msra.mxu0 %v869_v36  ;;  %v322_v17 = vld [vmem:[%s1625_s3 + $0x138] sm:$0xff]  ;;  %v339_v20 = vld [vmem:[%s1625_s3 + $0x1c0] sm:$0xff]  ;;  %v340_v21 = vld [vmem:[%s1625_s3 + $0x1c8] sm:$0xff]  ;;  %v917_v22 = vpack.c.bf16 %v290_v14, %v289_v13  ;;  %v919_v24 = vpack.c.bf16 %v308_v19, %v307_v18  ;;  %v1547_v6 = vshrl.u32 %v117_v5, 7 }
  0x36   :  { %902 = vmatpush1.bf16.msra.mxu1 %v901_v37  ;;  %904 = vmatprep.subr.bf16.mxu0 %v903_v38  ;;  %v949_v23 = vpack.c.bf16 %v322_v17, %v321_v15  ;;  %v291_v25 = vld [vmem:[%s1625_s3 + $0x40] sm:$0xff]  ;;  %v292_v26 = vld [vmem:[%s1625_s3 + $0x48] sm:$0xff]  ;;  %v951_v28 = vpack.c.bf16 %v340_v21, %v339_v20  ;;  %v309_v30 = vld [vmem:[%s1625_s3 + $0xd0] sm:$0xff] }
  0x37   :  { %936 = vmatprep.subr.bf16.mxu1 %v935_v42  ;;  %v323_v27 = vld [vmem:[%s1625_s3 + $0x140] sm:$0xff]  ;;  %v324_v29 = vld [vmem:[%s1625_s3 + $0x148] sm:$0xff]  ;;  %v310_v31 = vld [vmem:[%s1625_s3 + $0xd8] sm:$0xff]  ;;  %v921_v34 = vpack.c.bf16 %v292_v26, %v291_v25  ;;  %v119_v7 = vsub.s32 0, %v1547_v6  ;;  %v127_v9 = vsub.s32 2, %v1547_v6 }
  0x38   :  { %202 = vmatmul.mubr.f32.vlgmr.msra.gmra.mrb[0].mxu0 %v50_v48  ;;  %v341_v32 = vld [vmem:[%s1625_s3 + $0x1d0] sm:$0xff]  ;;  %v342_v33 = vld [vmem:[%s1625_s3 + $0x1d8] sm:$0xff]  ;;  %v953_v35 = vpack.c.bf16 %v324_v29, %v323_v27  ;;  %v923_v36 = vpack.c.bf16 %v310_v31, %v309_v30  ;;  %v311_v42 = vld [vmem:[%s1625_s3 + $0xe0] sm:$0xff] }
  0x39   :  { %273 = vmatmul.mubr.f32.vlgmr.msra.gmra.mrb[0].mxu1 %v50_v48  ;;  %906 = vmatpush3.bf16.msra.mxu0 %v905_v49  ;;  %v293_v37 = vld [vmem:[%s1625_s3 + $0x50] sm:$0xff]  ;;  %v294_v38 = vld [vmem:[%s1625_s3 + $0x58] sm:$0xff]  ;;  %v955_v40 = vpack.c.bf16 %v342_v33, %v341_v32  ;;  %v312_v43 = vld [vmem:[%s1625_s3 + $0xe8] sm:$0xff] }
  0x3a   :  { %938 = vmatpush3.bf16.msra.mxu1 %v937_v50  ;;  %908 = vmatprep.subr.bf16.mxu0 %v907_v51  ;;  %v325_v39 = vld [vmem:[%s1625_s3 + $0x150] sm:$0xff]  ;;  %v326_v41 = vld [vmem:[%s1625_s3 + $0x158] sm:$0xff]  ;;  %v343_v44 = vld [vmem:[%s1625_s3 + $0x1e0] sm:$0xff]  ;;  %v925_v46 = vpack.c.bf16 %v294_v38, %v293_v37  ;;  %v927_v48 = vpack.c.bf16 %v312_v43, %v311_v42 }
  0x3b   :  { %940 = vmatprep.subr.bf16.mxu1 %v939_v55  ;;  %v344_v45 = vld [vmem:[%s1625_s3 + $0x1e8] sm:$0xff]  ;;  %v957_v47 = vpack.c.bf16 %v326_v41, %v325_v39  ;;  %v295_v50 = vld [vmem:[%s1625_s3 + $0x60] sm:$0xff]  ;;  %v313_v56 = vld [vmem:[%s1625_s3 + $0xf0] sm:$0xff] }
  0x3c   :  { %v959_v49 = vpack.c.bf16 %v344_v45, %v343_v44  ;;  %v296_v51 = vld [vmem:[%s1625_s3 + $0x68] sm:$0xff]  ;;  %v327_v52 = vld [vmem:[%s1625_s3 + $0x160] sm:$0xff]  ;;  %v314_v57 = vld [vmem:[%s1625_s3 + $0xf8] sm:$0xff] }
  0x3d   :  { %910 = vmatpush3.bf16.msra.mxu0 %v909_v61  ;;  %v929_v53 = vpack.c.bf16 %v296_v51, %v295_v50  ;;  %v328_v54 = vld [vmem:[%s1625_s3 + $0x168] sm:$0xff]  ;;  %v345_v58 = vld [vmem:[%s1625_s3 + $0x1f0] sm:$0xff]  ;;  %v931_v59 = vpack.c.bf16 %v314_v57, %v313_v56  ;;  %v346_v60 = vld [vmem:[%s1625_s3 + $0x1f8] sm:$0xff] }
  0x3e   :  { %942 = vmatpush3.bf16.msra.mxu1 %v941_v62  ;;  %912 = vmatprep.subr.bf16.mxu0 %v911_v63  ;;  %v961_v55 = vpack.c.bf16 %v328_v54, %v327_v52  ;;  %v297_v61 = vld [vmem:[%s1625_s3 + $0x70] sm:$0xff]  ;;  %v298_v62 = vld [vmem:[%s1625_s3 + $0x78] sm:$0xff]  ;;  %v963_v63 = vpack.c.bf16 %v346_v60, %v345_v58  ;;  %v115_v8 = vld [vmem:[%s1624_s2] sm:$0xf] }
  0x3f   :  { %944 = vmatprep.subr.bf16.mxu1 %v943_v4  ;;  %v933_v1 = vpack.c.bf16 %v298_v62, %v297_v61  ;;  %v329_v2 = vld [vmem:[%s1625_s3 + $0x170] sm:$0xff]  ;;  %v330_v3 = vld [vmem:[%s1625_s3 + $0x178] sm:$0xff]  ;;  %v128_v13 = vrot.slane %v115_v8, %v127_v9  ;;  %v496_v31 = vld [vmem:[%s1627_s5] sm:$0xff] }
  0x40   :  { %v965_v4 = vpack.c.bf16 %v330_v3, %v329_v2  ;;  %v499_v29 = vld [vmem:[%s1627_s5 + $0x18] sm:$0xff]  ;;  %v498_v32 = vld [vmem:[%s1627_s5 + $0x10] sm:$0xff]  ;;  %v608_v39 = vld [vmem:[#allocation2 + $0x80] sm:$0xff] }
  0x41   :  { %914 = vmatpush3.bf16.msra.mxu0 %v913_v10  ;;  %v123_v10 = vsub.s32 1, %v1547_v6  ;;  %v969_v33 = vpack.c.bf16 %v498_v32, %v496_v31  ;;  %v502_v37 = vld [vmem:[%s1627_s5 + $0x30] sm:$0xff]  ;;  %v592_v41 = vld [vmem:[#allocation2] sm:$0xff]  ;;  %v593_v43 = vld [vmem:[#allocation2 + $0x8] sm:$0xff] }
  0x42   :  { %946 = vmatpush3.bf16.msra.mxu1 %v945_v11  ;;  %916 = vmatprep.subr.bf16.mxu0 %v915_v12  ;;  %v131_v11 = vsub.s32 3, %v1547_v6  ;;  %v120_v12 = vrot.slane %v115_v8, %v119_v7  ;;  %v610_v44 = vld [vmem:[#allocation2 + $0x90] sm:$0xff]  ;;  %v611_v45 = vld [vmem:[#allocation2 + $0x98] sm:$0xff]  ;;  %v612_v50 = vld [vmem:[#allocation2 + $0xa0] sm:$0xff] }
  0x43   :  { %948 = vmatprep.subr.bf16.mxu1 %v947_v16  ;;  %v124_v14 = vrot.slane %v115_v8, %v123_v10  ;;  %v613_v51 = vld [vmem:[#allocation2 + $0xa8] sm:$0xff]  ;;  %v596_v54 = vld [vmem:[#allocation2 + $0x20] sm:$0xff]  ;;  %v614_v56 = vld [vmem:[#allocation2 + $0xb0] sm:$0xff] }
  0x44   :  { %v132_v15 = vrot.slane %v115_v8, %v131_v11  ;;  %v615_v57 = vld [vmem:[#allocation2 + $0xb8] sm:$0xff]  ;;  %v598_v60 = vld [vmem:[#allocation2 + $0x30] sm:$0xff]  ;;  %v616_v62 = vld [vmem:[#allocation2 + $0xc0] sm:$0xff] }
  0x45   :  { %918 = vmatpush3.bf16.msra.mxu0 %v917_v22  ;;  %v599_v61 = vld [vmem:[#allocation2 + $0x38] sm:$0xff]  ;;  %v600_v3 = vld [vmem:[#allocation2 + $0x40] sm:$0xff]  ;;  %v618_v5 = vld [vmem:[#allocation2 + $0xd0] sm:$0xff] }
  0x46   :  { %950 = vmatpush3.bf16.msra.mxu1 %v949_v23  ;;  %920 = vmatprep.subr.bf16.mxu0 %v919_v24  ;;  %v619_v8 = vld [vmem:[#allocation2 + $0xd8] sm:$0xff] }
  0x47   :  { %952 = vmatprep.subr.bf16.mxu1 %v951_v28  ;;  %v497_v28 = vld [vmem:[%s1627_s5 + $0x8] sm:$0xff]  ;;  %v995_v11 = vpack.c.bf16 %v619_v8, %v618_v5  ;;  %v623_v31 = vld [vmem:[#allocation2 + $0xf8] sm:$0xff] }
  0x48   :  { %v967_v30 = vpack.c.bf16 %v499_v29, %v497_v28  ;;  %v605_v28 = vld [vmem:[#allocation2 + $0x68] sm:$0xff] }
  0x49   :  { %922 = vmatpush3.bf16.msra.mxu0 %v921_v34  ;;  %v503_v34 = vld [vmem:[%s1627_s5 + $0x38] sm:$0xff] }
  0x4a   :  { %954 = vmatpush3.bf16.msra.mxu1 %v953_v35  ;;  %924 = vmatprep.subr.bf16.mxu0 %v923_v36  ;;  %v500_v36 = vld [vmem:[%s1627_s5 + $0x20] sm:$0xff] }
  0x4b   :  { %956 = vmatprep.subr.bf16.mxu1 %v955_v40  ;;  %v973_v38 = vpack.c.bf16 %v502_v37, %v500_v36  ;;  %v609_v40 = vld [vmem:[#allocation2 + $0x88] sm:$0xff] }
  0x4c   :  { %v975_v42 = vpack.c.bf16 %v609_v40, %v608_v39 }
  0x4d   :  { %926 = vmatpush3.bf16.msra.mxu0 %v925_v46  ;;  %v977_v46 = vpack.c.bf16 %v593_v43, %v592_v41 }
  0x4e   :  { %958 = vmatpush3.bf16.msra.mxu1 %v957_v47  ;;  %928 = vmatprep.subr.bf16.mxu0 %v927_v48  ;;  %v979_v47 = vpack.c.bf16 %v611_v45, %v610_v44  ;;  %v594_v48 = vld [vmem:[#allocation2 + $0x10] sm:$0xff] }
  0x4f   :  { %960 = vmatprep.subr.bf16.mxu1 %v959_v49  ;;  %v595_v49 = vld [vmem:[#allocation2 + $0x18] sm:$0xff] }
  0x50   :  { %v981_v52 = vpack.c.bf16 %v595_v49, %v594_v48 }
  0x51   :  { %930 = vmatpush3.bf16.msra.mxu0 %v929_v53  ;;  %v983_v53 = vpack.c.bf16 %v613_v51, %v612_v50 }
  0x52   :  { %962 = vmatpush3.bf16.msra.mxu1 %v961_v55  ;;  %932 = vmatprep.subr.bf16.mxu0 %v931_v59  ;;  %v597_v55 = vld [vmem:[#allocation2 + $0x28] sm:$0xff]  ;;  %v987_v59 = vpack.c.bf16 %v615_v57, %v614_v56 }
  0x53   :  { %964 = vmatprep.subr.bf16.mxu1 %v963_v63  ;;  %v985_v58 = vpack.c.bf16 %v597_v55, %v596_v54  ;;  %v617_v63 = vld [vmem:[#allocation2 + $0xc8] sm:$0xff] }
  0x54   :  { %v991_v2 = vpack.c.bf16 %v617_v63, %v616_v62 }
  0x55   :  { %934 = vmatpush3.bf16.msra.mxu0 %v933_v1  ;;  %v989_v1 = vpack.c.bf16 %v599_v61, %v598_v60 }
  0x56   :  { %966 = vmatpush3.bf16.msra.mxu1 %v965_v4  ;;  %968 = vmatprep.subr.bf16.mxu0 %v967_v30  ;;  %v601_v4 = vld [vmem:[#allocation2 + $0x48] sm:$0xff]  ;;  %v622_v30 = vld [vmem:[#allocation2 + $0xf0] sm:$0xff] }
  0x57   :  { %976 = vmatprep.subr.bf16.mxu1 %v975_v42  ;;  %v993_v9 = vpack.c.bf16 %v601_v4, %v600_v3  ;;  %v1003_v32 = vpack.c.bf16 %v623_v31, %v622_v30 }
 0x10b   :  { %v203_v16 = vpop.f32.mrb[0].mxu0 }
 0x10c   :  { %v204_v17 = vadd.f32 %v203_v16, %v120_v12  ;;  %v274_v18 = vpop.f32.mrb[0].mxu1  ;;  %v205_v19 = vpop.f32.mrb[1].mxu0  ;;  %v602_v12 = vld [vmem:[#allocation2 + $0x50] sm:$0xff] }
 0x10d   :  { %v275_v20 = vadd.f32 %v274_v18, %v128_v13  ;;  %v206_v21 = vadd.f32 %v205_v19, %v124_v14  ;;  %v276_v22 = vpop.f32.mrb[1].mxu1  ;;  %v603_v13 = vld [vmem:[#allocation2 + $0x58] sm:$0xff]  ;;  %v620_v14 = vld [vmem:[#allocation2 + $0xe0] sm:$0xff] }
 0x10e   :  { %v277_v23 = vadd.f32 %v276_v22, %v132_v15  ;;  %v279_v26 = vmax.f32 %v204_v17, 0.0  ;;  %v621_v15 = vld [vmem:[#allocation2 + $0xe8] sm:$0xff]  ;;  %v997_v16 = vpack.c.bf16 %v603_v13, %v602_v12 }
 0x10f   :  { %v281_v24 = vmax.f32 %v275_v20, 0.0  ;;  %v280_v25 = vmax.f32 %v206_v21, 0.0  ;;  %v999_v17 = vpack.c.bf16 %v621_v15, %v620_v14  ;;  %v731_v20 = vld [vmem:[%s1626_s4] ss:$0 sm:$0xff] }
 0x110   :  { %v282_v27 = vmax.f32 %v277_v23, 0.0 }
 0x111   :  { %418 = vmatprep.mubr.f32.mxu0 %v280_v25 }
 0x112   :  { %488 = vmatprep.mubr.f32.mxu1 %v282_v27  ;;  %419 = vmatmul.mubr.f32.vlgmr.msra.gmra.mrb[2].mxu0 %v279_v26  ;;  %v604_v27 = vld [vmem:[#allocation2 + $0x60] sm:$0xff] }
 0x113   :  { %489 = vmatmul.mubr.f32.vlgmr.msra.gmra.mrb[2].mxu1 %v281_v24  ;;  %583 = vmatprep.mubr.f32.mxu0 %v1088_v0  ;;  %v501_v0 = vld [vmem:[%s1627_s5 + $0x28] sm:$0xff]  ;;  %v1001_v29 = vpack.c.bf16 %v605_v28, %v604_v27 }
 0x114   :  { %970 = vmatpush1.bf16.msra.mxu0 %v969_v33  ;;  %v971_v35 = vpack.c.bf16 %v503_v34, %v501_v0  ;;  %978 = vmatpush3.bf16.msra.mxu1 %v977_v46  ;;  %v606_v33 = vld [vmem:[#allocation2 + $0x70] sm:$0xff]  ;;  %v607_v0 = vld [vmem:[#allocation2 + $0x78] sm:$0xff] }
 0x115   :  { %980 = vmatprep.subr.bf16.mxu1 %v979_v47  ;;  %v1005_v34 = vpack.c.bf16 %v607_v0, %v606_v33 }
 0x116   :  { %972 = vmatprep.subr.bf16.mxu0 %v971_v35  ;;  %v504_v35 = vld [vmem:[%s1628_s6] sm:$0x3] }
 0x117   :  { %v509_v36 = vrot.slane %v504_v35, %v119_v7  ;;  %v513_v37 = vrot.slane %v504_v35, %v123_v10 }
 0x118   :  { %974 = vmatpush1.bf16.msra.mxu0 %v973_v38  ;;  %982 = vmatpush3.bf16.msra.mxu1 %v981_v52 }
 0x119   :  { %984 = vmatprep.subr.bf16.mxu1 %v983_v53 }
 0x11c   :  { %986 = vmatpush3.bf16.msra.mxu1 %v985_v58 }
 0x11d   :  { %988 = vmatprep.subr.bf16.mxu1 %v987_v59 }
 0x120   :  { %990 = vmatpush3.bf16.msra.mxu1 %v989_v1 }
 0x121   :  { %992 = vmatprep.subr.bf16.mxu1 %v991_v2 }
 0x124   :  { %994 = vmatpush3.bf16.msra.mxu1 %v993_v9 }
 0x125   :  { %996 = vmatprep.subr.bf16.mxu1 %v995_v11 }
 0x128   :  { %998 = vmatpush3.bf16.msra.mxu1 %v997_v16 }
 0x129   :  { %1000 = vmatprep.subr.bf16.mxu1 %v999_v17 }
 0x12c   :  { %1002 = vmatpush3.bf16.msra.mxu1 %v1001_v29 }
 0x12d   :  { %1004 = vmatprep.subr.bf16.mxu1 %v1003_v32 }
 0x130   :  { %1006 = vmatpush3.bf16.msra.mxu1 %v1005_v34 }
 0x1e5   :  { %v766_v18 = vpop.f32.mrb[2].mxu0 }
 0x1e6   :  { %v801_v19 = vpop.f32.mrb[2].mxu1  ;;  %v767_v21 = vpop.f32.mrb[3].mxu0 }
 0x1e7   :  { %v768_v22 = vadd.f32 %v767_v21, %v766_v18  ;;  %v802_v23 = vpop.f32.mrb[3].mxu1 }
 0x1e8   :  { %v803_v24 = vadd.f32 %v802_v23, %v801_v19 }
 0x1e9   :  { %v421_v25 = vadd.f32 %v768_v22, %v731_v20 }
 0x1eb   :  { %v491_v26 = vadd.f32 %v803_v24, %v421_v25 }
 0x1ed   :  { %732 = vmatmul.mubr.msk.f32.vlgmr.msra.gmra.mrb[4].mxu0 %vm494_vm0, %v491_v26  ;;  %495 = vst.msk [vmem:[#allocation5] sm:$0xff] %vm494_vm0, %v491_v26 }
 0x2c0   :  { %v585_v38 = vpop.f32.mrb[4].mxu0 }
 0x2c1   :  { %v586_v39 = vadd.f32 %v585_v38, %v509_v36  ;;  %v587_v40 = vpop.f32.mrb[5].mxu0 }
 0x2c2   :  { %v588_v41 = vadd.f32 %v587_v40, %v513_v37 }
 0x2c3   :  { %v590_v43 = vmax.f32 %v586_v39, 0.0 }
 0x2c4   :  { %v591_v42 = vmax.f32 %v588_v41, 0.0 }
 0x2c6   :  { %695 = vmatprep.mubr.f32.mxu1 %v591_v42 }
 0x2c7   :  { %696 = vmatmul.mubr.f32.vlgmr.msra.gmra.mrb[4].mxu1 %v590_v43 }
 0x2c8   :  { %1046 = shalt.err (!%p1043_p12)
}
 0x2c9   :  { %s1047_s21 = scalar_lea.hbm %s1631_s9, 128 }
 0x2ca   :  { %p1048_p13 = scmp.ne.s32.totalorder %s1631_s9, %s1047_s21  ;;  %p1051_p0 = scmp.lt.u32.totalorder %s1047_s21, %s1631_s9 }
 0x2cc   :  { %p1053_p1 = pnand %p1051_p0, %p1048_p13 }
 0x2ce   :  { %1056 = shalt.err (!%p1053_p1)
}
 0x2cf   :  { %711 = dma.vmem_to_hbm [thread:$0]  %s709_s18, 128, %s1631_s9, [#allocation4]   ;;  %v733_v7 = vld [vmem:[%s1630_s8] ss:$0 sm:$0xff] }
 0x2d0   :  { %s1090_s28 = smov [#allocation6]  }
 0x2d1   :  { %s718_s29 = sshll.u32 %s1090_s28, 4  ;;  %s719_s29 = int_to_ptr.vmem [resolvable:$true] %s718_s29 }
 0x2d2   :  { %s1057_s30 = scalar_lea.vmem %s719_s29, 128  ;;  %p1062_p3 = scmp.lt.s32.totalorder %s719_s29, %s719_s29 }
 0x2d3   :  { %p1058_p2 = scmp.ne.s32.totalorder %s719_s29, %s1057_s30  ;;  %p1063_p4 = scmp.lt.s32.totalorder %s1057_s30, %s1057_s30 }
 0x2d5   :  { %p1064_p5 = por %p1063_p4, %p1062_p3 }
 0x2d7   :  { %p1065_p6 = pnand %p1064_p5, %p1058_p2 }
 0x39a   :  { %v836_v6 = vpop.f32.mrb[4].mxu1 }
 0x39b   :  { %v837_v10 = vpop.f32.mrb[5].mxu1 }
 0x39c   :  { %v838_v44 = vadd.f32 %v837_v10, %v836_v6 }
 0x39e   :  { %v698_v45 = vadd.f32 %v838_v44, %v733_v7 }
 0x3a0   :  { %701 = vst [vmem:[#allocation6] sm:$0xff] %v698_v45 }
 0x3a1   :  { %1068 = shalt.err (!%p1065_p6)
}
 0x3a2   :  { %s1069_s12 = scalar_lea.hbm %s1632_s10, 128 }
 0x3a3   :  { %p1070_p7 = scmp.ne.s32.totalorder %s1632_s10, %s1069_s12  ;;  %p1073_p8 = scmp.lt.u32.totalorder %s1069_s12, %s1632_s10 }
 0x3a5   :  { %p1075_p9 = pnand %p1073_p8, %p1070_p7 }
 0x3a7   :  { %1078 = shalt.err (!%p1075_p9)
}
 0x3a8   :  { %721 = dma.vmem_to_hbm [thread:$0]  %s719_s29, 128, %s1632_s10, [#allocation7]  }
 0x3a9   :  { %1081 = dma.done.wait [#allocation4], 128  }
 0x3aa   :  { %1082 = vsyncadd [#allocation4], 4294967168 }
 0x3ab   :  { %1083 = dma.done.wait [#allocation7], 128  }
 0x3ac   :  { %1084 = vsyncadd [#allocation7], 4294967168 }
 0x3ad   :  { %728 = vsyncpa [#allocation3], 1 }
 0x3ae   :  { %729 = vsyncpa [#allocation4], 1 }
 0x3af   :  { %730 = vsyncpa [#allocation7], 1 }

</bundles_post_ra>
